<compile_context>
chip_gen: v5e
topology: v5e:2x2
jax: 0.10.0
libtpu: 0.0.40
codegen_flags: <defaults>
</compile_context>

<pallas_src>
import jax
import jax.numpy as jnp
import numpy as np
from jax.experimental import pallas as pl
from jax.experimental.pallas import tpu as pltpu

# ---------------- model hyper-parameters (small, consistent with module) ----
SEQ_LEN    = 16
PRED_LEN   = 8
ENC_IN     = 4
PERIOD_LEN = 4
BATCH      = 2
N_FEATURES = 3                       # history_data[..., 0] is used

SEG_NUM_X  = SEQ_LEN // PERIOD_LEN   # 4
SEG_NUM_Y  = PRED_LEN // PERIOD_LEN  # 2
PAD        = PERIOD_LEN // 2         # 2
KSIZE      = 1 + 2 * PAD             # 5  (nn.Conv1d kernel_size)


# ---------------- Pallas kernel ---------------------------------------------
def sparsetsf_kernel(x_ref, conv_w_ref, lin_w_ref, out_ref):
    """Whole batch in one invocation, batch folded onto lanes.

    x_ref      : VMEM (SEQ_LEN,  B*ENC_IN)  float32  (time on sublanes,
                                                      batch*channel on lanes)
    conv_w_ref : SMEM (KSIZE,)              float32  shared depthwise taps
    lin_w_ref  : SMEM (SEG_NUM_Y*SEG_NUM_X,) float32 nn.Linear weight, flat
    out_ref    : VMEM (PRED_LEN, B*ENC_IN)  float32
    """
    L, C = x_ref.shape

    # Scalar weights live in SMEM (flat 1D arrays -> no 2D SMEM padding).
    w  = [conv_w_ref[k] for k in range(KSIZE)]                 # conv taps
    lw = [lin_w_ref[i] for i in range(SEG_NUM_Y * SEG_NUM_X)]  # linear weights

    x = x_ref[...]                                             # (L, C)

    # ----- instance normalization: per-series temporal mean ------------------
    mean = jnp.mean(x, axis=0, keepdims=True)                  # (1, C)
    xc = x - mean

    # ----- "same" depthwise 1D conv along time (cross-correlation, no bias) --
    # conv[t] = sum_k w[k] * xc[t + k - PAD], zero outside [0, L).
    # Center tap seeds the accumulator; the other taps use XLU sublane rolls
    # (rolled[t] = xc[(t + s) mod L], wrapped rows masked to zero).  Batch is
    # on lanes, so a single roll covers every series with no cross-batch leak.
    t_idx = jax.lax.broadcasted_iota(jnp.int32, (L, C), 0)     # time index
    conv = w[PAD] * xc
    for k in range(KSIZE):
        s = k - PAD
        if s == 0:
            continue
        rolled = pltpu.roll(xc, shift=(-s) % L, axis=0)
        mask = jnp.logical_and(t_idx + s >= 0, t_idx + s < L)
        conv = conv + w[k] * jnp.where(mask, rolled, 0.0)
    xr = conv + xc                                             # residual add

    # ----- sparse linear across segments --------------------------------------
    #   y[sy*P + t, c] = sum_sx W[sy, sx] * xr[sx*P + t, c]
    # Written segment-by-segment straight into out_ref (no concatenate), with
    # the temporal mean added back.
    for sy in range(SEG_NUM_Y):
        acc = lw[sy * SEG_NUM_X] * xr[0:PERIOD_LEN, :]
        for sx in range(1, SEG_NUM_X):
            acc = acc + lw[sy * SEG_NUM_X + sx] * \
                xr[sx * PERIOD_LEN:(sx + 1) * PERIOD_LEN, :]
        out_ref[sy * PERIOD_LEN:(sy + 1) * PERIOD_LEN, :] = acc + mean


# ---------------- wrapper -----------------------------------------------------
def sparsetsf_forward(history_data, conv_w, lin_w):
    """history_data: (B, SEQ_LEN, ENC_IN, F) -> (B, PRED_LEN, ENC_IN, 1)."""
    B, L, N, _ = history_data.shape
    x = history_data[..., 0]                          # (B, L, N)

    # Layout plumbing (wrapper-side, free): time on sublanes, batch*chan lanes.
    x2d = jnp.transpose(x, (1, 0, 2)).reshape(L, B * N)   # (L, B*N)

    conv_w_flat = conv_w.reshape(-1)                  # (KSIZE,)          1D SMEM
    lin_w_flat = lin_w.reshape(-1)                    # (SEG_Y*SEG_X,)    1D SMEM

    out2d = pl.pallas_call(
        sparsetsf_kernel,
        out_shape=jax.ShapeDtypeStruct((PRED_LEN, B * N), jnp.float32),
        in_specs=[
            pl.BlockSpec(memory_space=pltpu.MemorySpace.VMEM),   # series slab
            pl.BlockSpec(memory_space=pltpu.MemorySpace.SMEM),   # conv taps
            pl.BlockSpec(memory_space=pltpu.MemorySpace.SMEM),   # linear weight
        ],
        out_specs=pl.BlockSpec(memory_space=pltpu.MemorySpace.VMEM),
    )(x2d, conv_w_flat, lin_w_flat)                   # (PRED_LEN, B*N)

    out = jnp.transpose(out2d.reshape(PRED_LEN, B, N), (1, 0, 2))
    return out[..., None]                             # (B, PRED_LEN, N, 1)


# ---------------- pure-JAX reference (mirrors the PyTorch forward) -----------
def sparsetsf_reference(history_data, conv_w, lin_w):
    x = history_data[..., 0]                                  # (B, L, N)
    B = x.shape[0]
    w = conv_w.reshape(-1)
    seq_mean = jnp.mean(x, axis=1, keepdims=True)             # (B, 1, N)
    xc = jnp.transpose(x - seq_mean, (0, 2, 1))               # (B, N, L)
    xp = jnp.pad(xc, ((0, 0), (0, 0), (PAD, PAD)))
    conv = sum(w[k] * xp[..., k:k + SEQ_LEN] for k in range(KSIZE))
    xr = conv + xc
    xs = xr.reshape(B * ENC_IN, SEG_NUM_X, PERIOD_LEN).transpose(0, 2, 1)
    y = xs @ lin_w.T                                          # (B*N, P, seg_y)
    y = y.transpose(0, 2, 1).reshape(B, ENC_IN, PRED_LEN)
    y = jnp.transpose(y, (0, 2, 1)) + seq_mean                # (B, PRED_LEN, N)
    return y[..., None]


# ---------------- main --------------------------------------------------------
if __name__ == "__main__":
    key = jax.random.PRNGKey(0)
    k_conv, k_lin, k_data = jax.random.split(key, 3)

    # deterministic synthetic parameters (shapes match the module __init__)
    conv_w = jax.random.uniform(k_conv, (1, 1, KSIZE), jnp.float32, -0.5, 0.5)
    lin_w = jax.random.uniform(
        k_lin, (SEG_NUM_Y, SEG_NUM_X), jnp.float32, -0.5, 0.5)

    history_data = jax.random.normal(
        k_data, (BATCH, SEQ_LEN, ENC_IN, N_FEATURES), jnp.float32)

    y_kernel = sparsetsf_forward(history_data, conv_w, lin_w)
    y_kernel = jax.block_until_ready(y_kernel)

    y_ref = sparsetsf_reference(history_data, conv_w, lin_w)
    y_ref = jax.block_until_ready(y_ref)

    assert y_kernel.shape == (BATCH, PRED_LEN, ENC_IN, 1), y_kernel.shape
    np.testing.assert_allclose(
        np.asarray(y_kernel), np.asarray(y_ref), rtol=1e-5, atol=1e-5)

    print("KERNEL_OK")
</pallas_src>

<mosaic_0001>
module attributes {stable_mosaic.version = 11 : i64} {
  func.func @sparsetsf_kernel(%arg0: memref<16x8xf32, #tpu.memory_space<vmem>>, %arg1: memref<5xf32, #tpu.memory_space<smem>>, %arg2: memref<8xf32, #tpu.memory_space<smem>>, %arg3: memref<8x8xf32, #tpu.memory_space<vmem>>) attributes {dimension_semantics = [], scalar_prefetch = 0 : i64, scratch_operands = 0 : i64, tpu.core_type = #tpu.core_type<tc>} {
    %c0 = arith.constant 0 : index
    %0 = memref.load %arg1[%c0] : memref<5xf32, #tpu.memory_space<smem>>
    %c1 = arith.constant 1 : index
    %1 = memref.load %arg1[%c1] : memref<5xf32, #tpu.memory_space<smem>>
    %c2 = arith.constant 2 : index
    %2 = memref.load %arg1[%c2] : memref<5xf32, #tpu.memory_space<smem>>
    %c3 = arith.constant 3 : index
    %3 = memref.load %arg1[%c3] : memref<5xf32, #tpu.memory_space<smem>>
    %c4 = arith.constant 4 : index
    %4 = memref.load %arg1[%c4] : memref<5xf32, #tpu.memory_space<smem>>
    %c0_0 = arith.constant 0 : index
    %5 = memref.load %arg2[%c0_0] : memref<8xf32, #tpu.memory_space<smem>>
    %c1_1 = arith.constant 1 : index
    %6 = memref.load %arg2[%c1_1] : memref<8xf32, #tpu.memory_space<smem>>
    %c2_2 = arith.constant 2 : index
    %7 = memref.load %arg2[%c2_2] : memref<8xf32, #tpu.memory_space<smem>>
    %c3_3 = arith.constant 3 : index
    %8 = memref.load %arg2[%c3_3] : memref<8xf32, #tpu.memory_space<smem>>
    %c4_4 = arith.constant 4 : index
    %9 = memref.load %arg2[%c4_4] : memref<8xf32, #tpu.memory_space<smem>>
    %c5 = arith.constant 5 : index
    %10 = memref.load %arg2[%c5] : memref<8xf32, #tpu.memory_space<smem>>
    %c6 = arith.constant 6 : index
    %11 = memref.load %arg2[%c6] : memref<8xf32, #tpu.memory_space<smem>>
    %c7 = arith.constant 7 : index
    %12 = memref.load %arg2[%c7] : memref<8xf32, #tpu.memory_space<smem>>
    %c0_5 = arith.constant 0 : index
    %c0_6 = arith.constant 0 : index
    %13 = vector.load %arg0[%c0_5, %c0_6] : memref<16x8xf32, #tpu.memory_space<vmem>>, vector<16x8xf32>
    %cst = arith.constant dense<0.000000e+00> : vector<8xf32>
    %14 = vector.multi_reduction <add>, %13, %cst [0] : vector<16x8xf32> to vector<8xf32>
    %15 = vector.shape_cast %14 : vector<8xf32> to vector<1x8xf32>
    %cst_7 = arith.constant 1.600000e+01 : f32
    %16 = vector.broadcast %cst_7 : f32 to vector<1x8xf32>
    %17 = arith.divf %15, %16 : vector<1x8xf32>
    %18 = vector.broadcast %17 : vector<1x8xf32> to vector<16x8xf32>
    %19 = arith.subf %13, %18 : vector<16x8xf32>
    %20 = tpu.iota {dimensions = array<i32: 0>} : vector<16x8xi32>
    %21 = vector.broadcast %2 : f32 to vector<16x8xf32>
    %22 = arith.mulf %21, %19 : vector<16x8xf32>
    %c2_i32 = arith.constant 2 : i32
    %23 = tpu.dynamic_rotate %19 by %c2_i32 dim 0 : vector<16x8xf32>, i32 -> vector<16x8xf32>
    %c-2_i32 = arith.constant -2 : i32
    %24 = vector.broadcast %c-2_i32 : i32 to vector<16x8xi32>
    %25 = arith.addi %20, %24 : vector<16x8xi32>
    %c0_i32 = arith.constant 0 : i32
    %26 = vector.broadcast %c0_i32 : i32 to vector<16x8xi32>
    %27 = arith.cmpi sge, %25, %26 : vector<16x8xi32>
    %c-2_i32_8 = arith.constant -2 : i32
    %28 = vector.broadcast %c-2_i32_8 : i32 to vector<16x8xi32>
    %29 = arith.addi %20, %28 : vector<16x8xi32>
    %c16_i32 = arith.constant 16 : i32
    %30 = vector.broadcast %c16_i32 : i32 to vector<16x8xi32>
    %31 = arith.cmpi slt, %29, %30 : vector<16x8xi32>
    %32 = arith.andi %27, %31 : vector<16x8xi1>
    %cst_9 = arith.constant 0.000000e+00 : f32
    %33 = vector.broadcast %cst_9 : f32 to vector<16x8xf32>
    %34 = arith.select %32, %23, %33 : vector<16x8xi1>, vector<16x8xf32>
    %35 = vector.broadcast %0 : f32 to vector<16x8xf32>
    %36 = arith.mulf %35, %34 : vector<16x8xf32>
    %37 = arith.addf %22, %36 : vector<16x8xf32>
    %c1_i32 = arith.constant 1 : i32
    %38 = tpu.dynamic_rotate %19 by %c1_i32 dim 0 : vector<16x8xf32>, i32 -> vector<16x8xf32>
    %c-1_i32 = arith.constant -1 : i32
    %39 = vector.broadcast %c-1_i32 : i32 to vector<16x8xi32>
    %40 = arith.addi %20, %39 : vector<16x8xi32>
    %c0_i32_10 = arith.constant 0 : i32
    %41 = vector.broadcast %c0_i32_10 : i32 to vector<16x8xi32>
    %42 = arith.cmpi sge, %40, %41 : vector<16x8xi32>
    %c-1_i32_11 = arith.constant -1 : i32
    %43 = vector.broadcast %c-1_i32_11 : i32 to vector<16x8xi32>
    %44 = arith.addi %20, %43 : vector<16x8xi32>
    %c16_i32_12 = arith.constant 16 : i32
    %45 = vector.broadcast %c16_i32_12 : i32 to vector<16x8xi32>
    %46 = arith.cmpi slt, %44, %45 : vector<16x8xi32>
    %47 = arith.andi %42, %46 : vector<16x8xi1>
    %cst_13 = arith.constant 0.000000e+00 : f32
    %48 = vector.broadcast %cst_13 : f32 to vector<16x8xf32>
    %49 = arith.select %47, %38, %48 : vector<16x8xi1>, vector<16x8xf32>
    %50 = vector.broadcast %1 : f32 to vector<16x8xf32>
    %51 = arith.mulf %50, %49 : vector<16x8xf32>
    %52 = arith.addf %37, %51 : vector<16x8xf32>
    %c15_i32 = arith.constant 15 : i32
    %53 = tpu.dynamic_rotate %19 by %c15_i32 dim 0 : vector<16x8xf32>, i32 -> vector<16x8xf32>
    %c1_i32_14 = arith.constant 1 : i32
    %54 = vector.broadcast %c1_i32_14 : i32 to vector<16x8xi32>
    %55 = arith.addi %20, %54 : vector<16x8xi32>
    %c0_i32_15 = arith.constant 0 : i32
    %56 = vector.broadcast %c0_i32_15 : i32 to vector<16x8xi32>
    %57 = arith.cmpi sge, %55, %56 : vector<16x8xi32>
    %c1_i32_16 = arith.constant 1 : i32
    %58 = vector.broadcast %c1_i32_16 : i32 to vector<16x8xi32>
    %59 = arith.addi %20, %58 : vector<16x8xi32>
    %c16_i32_17 = arith.constant 16 : i32
    %60 = vector.broadcast %c16_i32_17 : i32 to vector<16x8xi32>
    %61 = arith.cmpi slt, %59, %60 : vector<16x8xi32>
    %62 = arith.andi %57, %61 : vector<16x8xi1>
    %cst_18 = arith.constant 0.000000e+00 : f32
    %63 = vector.broadcast %cst_18 : f32 to vector<16x8xf32>
    %64 = arith.select %62, %53, %63 : vector<16x8xi1>, vector<16x8xf32>
    %65 = vector.broadcast %3 : f32 to vector<16x8xf32>
    %66 = arith.mulf %65, %64 : vector<16x8xf32>
    %67 = arith.addf %52, %66 : vector<16x8xf32>
    %c14_i32 = arith.constant 14 : i32
    %68 = tpu.dynamic_rotate %19 by %c14_i32 dim 0 : vector<16x8xf32>, i32 -> vector<16x8xf32>
    %c2_i32_19 = arith.constant 2 : i32
    %69 = vector.broadcast %c2_i32_19 : i32 to vector<16x8xi32>
    %70 = arith.addi %20, %69 : vector<16x8xi32>
    %c0_i32_20 = arith.constant 0 : i32
    %71 = vector.broadcast %c0_i32_20 : i32 to vector<16x8xi32>
    %72 = arith.cmpi sge, %70, %71 : vector<16x8xi32>
    %c2_i32_21 = arith.constant 2 : i32
    %73 = vector.broadcast %c2_i32_21 : i32 to vector<16x8xi32>
    %74 = arith.addi %20, %73 : vector<16x8xi32>
    %c16_i32_22 = arith.constant 16 : i32
    %75 = vector.broadcast %c16_i32_22 : i32 to vector<16x8xi32>
    %76 = arith.cmpi slt, %74, %75 : vector<16x8xi32>
    %77 = arith.andi %72, %76 : vector<16x8xi1>
    %cst_23 = arith.constant 0.000000e+00 : f32
    %78 = vector.broadcast %cst_23 : f32 to vector<16x8xf32>
    %79 = arith.select %77, %68, %78 : vector<16x8xi1>, vector<16x8xf32>
    %80 = vector.broadcast %4 : f32 to vector<16x8xf32>
    %81 = arith.mulf %80, %79 : vector<16x8xf32>
    %82 = arith.addf %67, %81 : vector<16x8xf32>
    %83 = arith.addf %82, %19 : vector<16x8xf32>
    %84 = vector.extract_strided_slice %83 {offsets = [0, 0], sizes = [4, 8], strides = [1, 1]} : vector<16x8xf32> to vector<4x8xf32>
    %85 = vector.broadcast %5 : f32 to vector<4x8xf32>
    %86 = arith.mulf %85, %84 : vector<4x8xf32>
    %87 = vector.extract_strided_slice %83 {offsets = [4, 0], sizes = [4, 8], strides = [1, 1]} : vector<16x8xf32> to vector<4x8xf32>
    %88 = vector.broadcast %6 : f32 to vector<4x8xf32>
    %89 = arith.mulf %88, %87 : vector<4x8xf32>
    %90 = arith.addf %86, %89 : vector<4x8xf32>
    %91 = vector.extract_strided_slice %83 {offsets = [8, 0], sizes = [4, 8], strides = [1, 1]} : vector<16x8xf32> to vector<4x8xf32>
    %92 = vector.broadcast %7 : f32 to vector<4x8xf32>
    %93 = arith.mulf %92, %91 : vector<4x8xf32>
    %94 = arith.addf %90, %93 : vector<4x8xf32>
    %95 = vector.extract_strided_slice %83 {offsets = [12, 0], sizes = [4, 8], strides = [1, 1]} : vector<16x8xf32> to vector<4x8xf32>
    %96 = vector.broadcast %8 : f32 to vector<4x8xf32>
    %97 = arith.mulf %96, %95 : vector<4x8xf32>
    %98 = arith.addf %94, %97 : vector<4x8xf32>
    %99 = vector.broadcast %17 : vector<1x8xf32> to vector<4x8xf32>
    %100 = arith.addf %98, %99 : vector<4x8xf32>
    %c0_24 = arith.constant 0 : index
    %c0_25 = arith.constant 0 : index
    %101 = vector.load %arg3[%c0_24, %c0_25] : memref<8x8xf32, #tpu.memory_space<vmem>>, vector<4x8xf32>
    tpu.vector_store %arg3[%c0_24, %c0_25], %100 {strides = array<i32>} : memref<8x8xf32, #tpu.memory_space<vmem>>, vector<4x8xf32>,
    %102 = vector.extract_strided_slice %83 {offsets = [0, 0], sizes = [4, 8], strides = [1, 1]} : vector<16x8xf32> to vector<4x8xf32>
    %103 = vector.broadcast %9 : f32 to vector<4x8xf32>
    %104 = arith.mulf %103, %102 : vector<4x8xf32>
    %105 = vector.extract_strided_slice %83 {offsets = [4, 0], sizes = [4, 8], strides = [1, 1]} : vector<16x8xf32> to vector<4x8xf32>
    %106 = vector.broadcast %10 : f32 to vector<4x8xf32>
    %107 = arith.mulf %106, %105 : vector<4x8xf32>
    %108 = arith.addf %104, %107 : vector<4x8xf32>
    %109 = vector.extract_strided_slice %83 {offsets = [8, 0], sizes = [4, 8], strides = [1, 1]} : vector<16x8xf32> to vector<4x8xf32>
    %110 = vector.broadcast %11 : f32 to vector<4x8xf32>
    %111 = arith.mulf %110, %109 : vector<4x8xf32>
    %112 = arith.addf %108, %111 : vector<4x8xf32>
    %113 = vector.extract_strided_slice %83 {offsets = [12, 0], sizes = [4, 8], strides = [1, 1]} : vector<16x8xf32> to vector<4x8xf32>
    %114 = vector.broadcast %12 : f32 to vector<4x8xf32>
    %115 = arith.mulf %114, %113 : vector<4x8xf32>
    %116 = arith.addf %112, %115 : vector<4x8xf32>
    %117 = vector.broadcast %17 : vector<1x8xf32> to vector<4x8xf32>
    %118 = arith.addf %116, %117 : vector<4x8xf32>
    %c4_26 = arith.constant 4 : index
    %c0_27 = arith.constant 0 : index
    %119 = vector.load %arg3[%c4_26, %c0_27] : memref<8x8xf32, #tpu.memory_space<vmem>>, vector<4x8xf32>
    tpu.vector_store %arg3[%c4_26, %c0_27], %118 {strides = array<i32>} : memref<8x8xf32, #tpu.memory_space<vmem>>, vector<4x8xf32>,
    return
  }
}

</mosaic_0001>

<bundles_post_ra>
// kernel: tpu_custom_call.1
= control target key start
LH: loop header
LB: loop body
LE: loop exit
PB: predicated region body
PF: predicated region fallthrough
CT: control target
= control target key end

     0   :  { %8 = vsyncpa [#allocation4], 0  ;;  %s401_s0 = inlined_call_operand.vmem [shape: f32[16,8], index: 0, kind: input, shape index: {}]   ;;  %s402_s1 = inlined_call_operand.vmem [shape: f32[5], index: 1, kind: input, shape index: {}]   ;;  %s403_s2 = inlined_call_operand.vmem [shape: f32[8], index: 2, kind: input, shape index: {}]   ;;  %s404_s3 = inlined_call_operand.hbm [shape: f32[8,8], index: 3, kind: output, shape index: {}]  }
   0x1   :  { %9 = vsyncpa [#allocation6], 0 }
   0x2   :  { %10 = vsyncpa [#allocation3], 0  ;;  %s18_s14 = sshll.u32 %s402_s1, 4  ;;  %s27_s17 = sshll.u32 %s403_s2, 4  ;;  %s19_s14 = int_to_ptr.vmem [resolvable:$true] %s18_s14  ;;  %s28_s17 = int_to_ptr.vmem [resolvable:$true] %s27_s17 }
   0x3   :  { %s291_s18 = smov [#allocation2]   ;;  %s292_s19 = smov [#allocation5]  }
   0x4   :  { %21 = dma.vmem_to_smem %s19_s14, 16, %s291_s18, [#allocation4]  }
   0x5   :  { %30 = dma.vmem_to_smem %s28_s17, 16, %s292_s19, [#allocation6]  }
   0x6   :  { %285 = dma.done.wait [#allocation4], 16  }
   0x7   :  { %286 = vsyncadd [#allocation4], 4294967280 }
   0x8   :  { %287 = dma.done.wait [#allocation6], 16  }
   0x9   :  { %288 = vsyncadd [#allocation6], 4294967280 }
   0xa   :  { %39 = sfence }
   0xb   :  { %v53_v0 = vld [vmem:[%s401_s0] sm:$0xff]  ;;  %v54_v1 = vld [vmem:[%s401_s0 + $0x8] sm:$0xff]  ;;  %vm55_vm0 = vcmask 64512   ;;  %v293_v4 = vmov 16.0   ;;  %v75_v8 = vlaneseq  ;;  %s327_s2 = sld [smem:[#allocation2]]  ;;  %s294_s7 = smov [#allocation7]  }
   0xc   :  { %v56_v2 = vsel %vm55_vm0, %v53_v0, 0.0  ;;  %v57_v3 = vsel %vm55_vm0, %v54_v1, 0.0  ;;  %235 = vrcp.f32 %v293_v4  ;;  %s329_s23 = sld [smem:[#allocation2 + $0x1]]  ;;  %s207_s8 = sshll.u32 %s294_s7, 4  ;;  %vm181_vm10 = vcmask 60416   ;;  %s208_s8 = int_to_ptr.vmem [resolvable:$true] %s207_s8 }
   0xd   :  { %v58_v5 = vadd.f32 %v57_v3, %v56_v2  ;;  %s331_s24 = sld [smem:[#allocation2 + $0x2]]  ;;  %v333_v14 = vshrl.u32 %v75_v8, 7  ;;  %s209_s11 = sshll.u32 %s404_s3, 4  ;;  %s210_s11 = int_to_ptr.hbm [resolvable:$true] %s209_s11 }
   0xe   :  { %s335_s0 = sld [smem:[#allocation2 + $0x3]] }
   0xf   :  { %v59_v6 = vrot.slane %v58_v5, 4  ;;  %s337_s25 = sld [smem:[#allocation2 + $0x4]]  ;;  %v77_v17 = vadd.s32 8, %v333_v14  ;;  %v86_v20 = vadd.s32 4294967294, %v333_v14  ;;  %v106_v21 = vadd.s32 4294967295, %v333_v14 }
  0x10   :  { %vm83_vm2 = vcmp.lt.s32.totalorder %v333_v14, 2  ;;  %vm103_vm3 = vcmp.lt.s32.totalorder %v333_v14, 1  ;;  %vm123_vm4 = vcmp.lt.s32.totalorder %v333_v14, 7  ;;  %vm143_vm6 = vcmp.lt.s32.totalorder %v333_v14, 6  ;;  %s355_s26 = sld [smem:[#allocation5]] }
  0x11   :  { %v60_v7 = vadd.f32 %v59_v6, %v58_v5  ;;  %v127_v23 = vadd.s32 1, %v77_v17  ;;  %v147_v24 = vadd.s32 2, %v77_v17  ;;  %vm88_vm5 = vcmp.ge.s32.totalorder %v86_v20, 0  ;;  %s357_s27 = sld [smem:[#allocation5 + $0x1]] }
  0x12   :  { %v236_v9 = vpop.eup %235  ;;  %v96_v27 = vstv %s327_s2  ;;  %vm108_vm7 = vcmp.ge.s32.totalorder %v106_v21, 0  ;;  %v116_v30 = vstv %s329_s23  ;;  %s359_s28 = sld [smem:[#allocation5 + $0x3]] }
  0x13   :  { %v61_v10 = vrot.slane %v60_v7, 2  ;;  %v66_v11 = vmul.f32 16.0, %v236_v9  ;;  %vm70_vm1 = vweird.f32 %v236_v9  ;;  %v78_v26 = vstv %s331_s24  ;;  %s370_s29 = sld [smem:[#allocation5 + $0x4]] }
  0x14   :  { %vm131_vm8 = vcmp.lt.s32.totalorder %v127_v23, 16  ;;  %v136_v31 = vstv %s335_s0  ;;  %vm151_vm9 = vcmp.lt.s32.totalorder %v147_v24, 16  ;;  %s375_s30 = sld [smem:[#allocation5 + $0x7]] }
  0x15   :  { %v62_v12 = vadd.f32 %v61_v10, %v60_v7  ;;  %v67_v13 = vsub.f32 1.0, %v66_v11  ;;  %v156_v32 = vstv %s337_s25  ;;  %s379_s4 = sld [smem:[#allocation5 + $0x5]] }
  0x16   :  { %s381_s5 = sld [smem:[#allocation5 + $0x2]]  ;;  %v163_v7 = vstv %s355_s26 }
  0x17   :  { %v63_v15 = vrot.slane %v62_v12, 1  ;;  %v68_v16 = vmul.f32 %v236_v9, %v67_v13  ;;  %s229_s6 = sld [smem:[#allocation5 + $0x6]]  ;;  %v165_v11 = vstv %s357_s27 }
  0x18   :  { %v174_v8 = vstv %s359_s28 }
  0x19   :  { %v64_v18 = vadd.f32 %v63_v15, %v62_v12  ;;  %v69_v19 = vadd.f32 %v236_v9, %v68_v16  ;;  %v183_v12 = vstv %s370_s29 }
  0x1b   :  { %v71_v22 = vsel %vm70_vm1, %v236_v9, %v69_v19  ;;  %v194_v9 = vstv %s375_s30  ;;  %v185_v13 = vstv %s379_s4 }
  0x1c   :  { %v342_v25 = vmul.f32 %v71_v22, %v64_v18  ;;  %v171_v15 = vstv %s381_s5 }
  0x1d   :  { %v191_v17 = vstv %s229_s6 }
  0x1e   :  { %v73_v28 = vsub.f32 %v53_v0, %v342_v25  ;;  %v74_v29 = vsub.f32 %v54_v1, %v342_v25 }
  0x20   :  { %v79_v33 = vmul.f32 %v78_v26, %v73_v28  ;;  %v80_v34 = vmul.f32 %v78_v26, %v74_v29  ;;  %v81_v35 = vrot.slane %v73_v28, 6  ;;  %v82_v36 = vrot.slane %v74_v29, 6 }
  0x21   :  { %v101_v37 = vrot.slane %v73_v28, 7  ;;  %v102_v38 = vrot.slane %v74_v29, 7  ;;  %v121_v39 = vrot.slane %v73_v28, 1  ;;  %v122_v40 = vrot.slane %v74_v29, 1 }
  0x22   :  { %v84_v41 = vsel %vm83_vm2, %v81_v35, %v82_v36  ;;  %v85_v42 = vsel %vm83_vm2, %v82_v36, %v81_v35  ;;  %v141_v43 = vrot.slane %v73_v28, 2  ;;  %v142_v44 = vrot.slane %v74_v29, 2 }
  0x23   :  { %v94_v45 = vsel %vm88_vm5, %v85_v42, 0.0  ;;  %v98_v46 = vmul.f32 %v96_v27, %v84_v41  ;;  %v104_v47 = vsel %vm103_vm3, %v101_v37, %v102_v38  ;;  %v105_v48 = vsel %vm103_vm3, %v102_v38, %v101_v37 }
  0x24   :  { %v97_v49 = vmul.f32 %v96_v27, %v94_v45  ;;  %v114_v50 = vsel %vm108_vm7, %v105_v48, 0.0  ;;  %v118_v51 = vmul.f32 %v116_v30, %v104_v47  ;;  %v124_v52 = vsel %vm123_vm4, %v121_v39, %v122_v40 }
  0x25   :  { %v100_v53 = vadd.f32 %v98_v46, %v80_v34  ;;  %v117_v54 = vmul.f32 %v116_v30, %v114_v50  ;;  %v125_v55 = vsel %vm123_vm4, %v122_v40, %v121_v39  ;;  %v137_v56 = vmul.f32 %v136_v31, %v124_v52 }
  0x26   :  { %v99_v57 = vadd.f32 %v97_v49, %v79_v33  ;;  %v135_v58 = vsel %vm131_vm8, %v125_v55, 0.0  ;;  %v144_v59 = vsel %vm143_vm6, %v141_v43, %v142_v44  ;;  %v145_v60 = vsel %vm143_vm6, %v142_v44, %v141_v43 }
  0x27   :  { %v120_v61 = vadd.f32 %v118_v51, %v100_v53  ;;  %v138_v62 = vmul.f32 %v136_v31, %v135_v58  ;;  %v155_v63 = vsel %vm151_vm9, %v145_v60, 0.0  ;;  %v157_v1 = vmul.f32 %v156_v32, %v144_v59 }
  0x28   :  { %v119_v0 = vadd.f32 %v117_v54, %v99_v57  ;;  %v158_v2 = vmul.f32 %v156_v32, %v155_v63 }
  0x29   :  { %v140_v3 = vadd.f32 %v138_v62, %v120_v61 }
  0x2a   :  { %v139_v4 = vadd.f32 %v137_v56, %v119_v0 }
  0x2b   :  { %v160_v5 = vadd.f32 %v158_v2, %v140_v3 }
  0x2c   :  { %v159_v6 = vadd.f32 %v157_v1, %v139_v4 }
  0x2d   :  { %v162_v10 = vadd.f32 %v160_v5, %v74_v29 }
  0x2e   :  { %v161_v14 = vadd.f32 %v159_v6, %v73_v28 }
  0x2f   :  { %v175_v16 = vmul.f32 %v174_v8, %v162_v10  ;;  %v195_v18 = vmul.f32 %v194_v9, %v162_v10  ;;  %v172_v24 = vmul.f32 %v171_v15, %v162_v10  ;;  %v192_v27 = vmul.f32 %v191_v17, %v162_v10 }
  0x30   :  { %v164_v19 = vmul.f32 %v163_v7, %v161_v14  ;;  %v166_v20 = vmul.f32 %v165_v11, %v161_v14  ;;  %v184_v21 = vmul.f32 %v183_v12, %v161_v14  ;;  %v186_v22 = vmul.f32 %v185_v13, %v161_v14 }
  0x31   :  { %v177_v31 = vrot.slane %v175_v16, 4  ;;  %v197_v29 = vrot.slane %v195_v18, 4 }
  0x32   :  { %v168_v23 = vrot.slane %v166_v20, 4  ;;  %v188_v26 = vrot.slane %v186_v22, 4 }
  0x34   :  { %v170_v30 = vadd.f32 %v168_v23, %v164_v19  ;;  %v190_v32 = vadd.f32 %v188_v26, %v184_v21 }
  0x36   :  { %v173_v33 = vadd.f32 %v172_v24, %v170_v30  ;;  %v193_v34 = vadd.f32 %v192_v27, %v190_v32 }
  0x38   :  { %v179_v35 = vadd.f32 %v177_v31, %v173_v33  ;;  %v199_v28 = vadd.f32 %v197_v29, %v193_v34 }
  0x3a   :  { %v180_v36 = vadd.f32 %v179_v35, %v342_v25  ;;  %v200_v37 = vadd.f32 %v199_v28, %v342_v25 }
  0x3c   :  { %182 = vst.msk [vmem:[#allocation7] sm:$0xf] %vm181_vm10, %v180_v36 }
  0x3d   :  { %201 = vst.msk [vmem:[#allocation7 + $0x4] sm:$0xf] %vm181_vm10, %v200_v37 }
  0x3e   :  { %212 = dma.vmem_to_hbm [thread:$0]  %s208_s8, 128, %s210_s11, [#allocation3]  }
  0x3f   :  { %289 = dma.done.wait [#allocation3], 128  }
  0x40   :  { %290 = vsyncadd [#allocation3], 4294967168 }
  0x41   :  { %217 = vsyncpa [#allocation3], 1 }
  0x42   :  { %218 = vsyncpa [#allocation4], 1 }
  0x43   :  { %219 = vsyncpa [#allocation6], 1 }

</bundles_post_ra>
